<compile_context>
chip_gen: v6e
topology: v6e:2x2x1
jax: 0.10.0
libtpu: 0.0.40
codegen_flags: <defaults>
</compile_context>

<pallas_src>
import functools

import jax
import jax.numpy as jnp
from jax.experimental import pallas as pl
from jax.experimental.pallas import tpu as pltpu


def channel_attention_kernel(x_ref, w1_ref, b1_ref, w2_ref, b2_ref, out_ref):
    BB, C, L = x_ref.shape                 # batches in this chunk, channels, length
    O = w2_ref.shape[1] // 2               # output channels

    # ---- build one stacked LHS: [x_0^T ; ... ; x_{BB-1}^T ; gap_0 ; ... ; gap_{BB-1}]
    # The NCW -> position-major flip happens here with 2-D transposes (XLU),
    # so the wrapper never does an HBM round-trip transpose.  BB is tiny and
    # statically unrolled.
    rows, gaps = [], []
    for b in range(BB):
        xb_t = x_ref[b].T                                   # (L, C)
        rows.append(xb_t)
        gaps.append(jnp.mean(xb_t, axis=0, keepdims=True))  # (1, C) global avg pool
    lhs = jnp.concatenate(rows + gaps, axis=0)              # (BB*L + BB, C)

    # ---- layer 1: fused [conv1 | fc1] weights, N = 2H (lane-dense at H=64).
    # Bias is [cb1 | 0], so the GAP rows' fc half stays bias-free.
    h = jnp.maximum(
        jnp.dot(lhs, w1_ref[...], preferred_element_type=jnp.float32)
        + b1_ref[...], 0.0)                                 # (M, 2H)

    # ---- layer 2: block-diagonal [[conv2, 0], [0, fc2]].  Each row's conv
    # hidden only feeds cols [:O] and its fc hidden only feeds cols [O:], so
    # one matmul serves both branches.  Bias is [cb2 | 0].
    a = jax.nn.sigmoid(
        jnp.dot(h, w2_ref[...], preferred_element_type=jnp.float32)
        + b2_ref[...])                                      # (M, 2O)

    # ---- gate + store, vectorized: conv branch rows (cols [:O]) scaled by the
    # per-batch fc/GAP row (cols [O:]).  One broadcast multiply, one store.
    a2 = a[:BB * L, :O].reshape(BB, L, O)                   # per-position conv branch
    a1 = a[BB * L:, O:].reshape(BB, 1, O)                   # per-batch fc branch
    out_ref[...] = (a1 * a2).astype(out_ref.dtype)


@functools.partial(jax.jit, static_argnames=("num_chunks",))
def channel_attention(x_ncl, fc1_t, fc2_t, cw1_t, cb1, cw2_t, cb2, *,
                      num_chunks=1):
    """x_ncl: (B, C, L) float32 in PyTorch NCW layout (no wrapper transpose).

    Weights are pre-transposed to (in, out).  `num_chunks=1` fully collapses
    the grid (best for v5e/v6e); use `num_chunks=2` on v7x so both TensorCores
    get one parallel step.
    """
    B, C, L = x_ncl.shape
    H = fc1_t.shape[1]
    O = fc2_t.shape[1]
    assert B % num_chunks == 0, (B, num_chunks)
    BB = B // num_chunks
    dt = x_ncl.dtype

    # Fused weights (tiny one-time preprocessing, fused under this jit).
    w1 = jnp.concatenate([cw1_t, fc1_t], axis=1)                       # (C, 2H)
    b1 = jnp.concatenate([cb1, jnp.zeros((1, H), dt)], axis=1)         # (1, 2H)
    z = jnp.zeros((H, O), dt)
    w2 = jnp.block([[cw2_t, z], [z, fc2_t]])                           # (2H, 2O)
    b2 = jnp.concatenate([cb2, jnp.zeros((1, O), dt)], axis=1)         # (1, 2O)

    M = B * L + B
    cost = pl.CostEstimate(
        flops=2 * M * C * (2 * H) + 2 * M * (2 * H) * (2 * O),
        transcendentals=M * 2 * O,
        bytes_accessed=4 * (B * C * L + C * 2 * H + 2 * H
                            + 2 * H * 2 * O + 2 * O + B * L * O))

    return pl.pallas_call(
        channel_attention_kernel,
        out_shape=jax.ShapeDtypeStruct((B, L, O), dt),
        grid_spec=pltpu.PrefetchScalarGridSpec(
            num_scalar_prefetch=0,
            grid=(num_chunks,),
            in_specs=[
                pl.BlockSpec((BB, C, L), lambda g: (g, 0, 0)),     # x chunk (NCW)
                pl.BlockSpec((C, 2 * H), lambda g: (0, 0)),        # [conv1 | fc1]
                pl.BlockSpec((1, 2 * H), lambda g: (0, 0)),        # [cb1 | 0]
                pl.BlockSpec((2 * H, 2 * O), lambda g: (0, 0)),    # blockdiag(conv2, fc2)
                pl.BlockSpec((1, 2 * O), lambda g: (0, 0)),        # [cb2 | 0]
            ],
            out_specs=pl.BlockSpec((BB, L, O), lambda g: (g, 0, 0)),
        ),
        compiler_params=pltpu.CompilerParams(
            dimension_semantics=("parallel",)),
        cost_estimate=cost,
    )(x_ncl, w1, b1, w2, b2)


def reference(x_ncl, fc1_t, fc2_t, cw1_t, cb1, cw2_t, cb2):
    """Pure-JAX reference mirroring the PyTorch forward."""
    x1 = jnp.mean(x_ncl, axis=2, keepdims=True)                # (B, C, 1)
    x1 = jnp.transpose(x1, (0, 2, 1))                          # (B, 1, C)
    x1 = jax.nn.sigmoid(jnp.maximum(x1 @ fc1_t, 0.0) @ fc2_t)  # (B, 1, O)

    x2 = jnp.transpose(x_ncl, (0, 2, 1))                       # (B, L, C)
    x2 = jnp.maximum(x2 @ cw1_t + cb1, 0.0)                    # (B, L, H)
    x2 = jax.nn.sigmoid(x2 @ cw2_t + cb2)                      # (B, L, O)
    return x1 * x2                                             # (B, L, O)


if __name__ == "__main__":
    # Small shapes consistent with the module (input_dim=C, hidden_dim=H, output_dim=O).
    B, C, L = 2, 32, 16
    H, O = 64, 32

    key = jax.random.PRNGKey(0)
    kx, k1, k2, k3, k4, k5, k6 = jax.random.split(key, 7)

    x = jax.random.normal(kx, (B, C, L), dtype=jnp.float32)

    # PyTorch params stored pre-transposed as (in, out):
    #   Linear(C,H,bias=False) weight (H,C)     -> fc1_t (C,H)
    #   Linear(H,O,bias=False) weight (O,H)     -> fc2_t (H,O)
    #   Conv1d(C,H,1) weight (H,C,1), bias (H,) -> cw1_t (C,H), cb1 (1,H)
    #   Conv1d(H,O,1) weight (O,H,1), bias (O,) -> cw2_t (H,O), cb2 (1,O)
    fc1_t = jax.random.normal(k1, (C, H), dtype=jnp.float32) * 0.1
    fc2_t = jax.random.normal(k2, (H, O), dtype=jnp.float32) * 0.1
    cw1_t = jax.random.normal(k3, (C, H), dtype=jnp.float32) * 0.1
    cb1 = jax.random.normal(k4, (1, H), dtype=jnp.float32) * 0.1
    cw2_t = jax.random.normal(k5, (H, O), dtype=jnp.float32) * 0.1
    cb2 = jax.random.normal(k6, (1, O), dtype=jnp.float32) * 0.1

    ref = reference(x, fc1_t, fc2_t, cw1_t, cb1, cw2_t, cb2)

    # Fully collapsed grid (single step, all batches fused): v5e/v6e preference.
    out = channel_attention(x, fc1_t, fc2_t, cw1_t, cb1, cw2_t, cb2,
                            num_chunks=1)
    out = jax.block_until_ready(out)
    assert out.shape == (B, L, O), out.shape
    assert jnp.allclose(out, ref, atol=1e-5, rtol=1e-5), (
        float(jnp.max(jnp.abs(out - ref))))

    # v7x-style: two parallel chunks so both TensorCores each run one step.
    out2 = channel_attention(x, fc1_t, fc2_t, cw1_t, cb1, cw2_t, cb2,
                             num_chunks=2)
    out2 = jax.block_until_ready(out2)
    assert jnp.allclose(out2, ref, atol=1e-5, rtol=1e-5), (
        float(jnp.max(jnp.abs(out2 - ref))))

    print("KERNEL_OK")
</pallas_src>

<mosaic_0001>
module attributes {stable_mosaic.version = 11 : i64} {
  func.func @channel_attention_kernel(%arg0: i32, %arg1: memref<2x32x16xf32, #tpu.memory_space<vmem>>, %arg2: memref<32x128xf32, #tpu.memory_space<vmem>>, %arg3: memref<1x128xf32, #tpu.memory_space<vmem>>, %arg4: memref<128x64xf32, #tpu.memory_space<vmem>>, %arg5: memref<1x64xf32, #tpu.memory_space<vmem>>, %arg6: memref<2x16x32xf32, #tpu.memory_space<vmem>>) attributes {dimension_semantics = [#tpu.dimension_semantics<parallel>], iteration_bounds = array<i64: 1>, scalar_prefetch = 0 : i64, scratch_operands = 0 : i64, tpu.core_type = #tpu.core_type<tc>, window_params = [{transform_indices = @transform_0, window_bounds = array<i64: 2, 32, 16>}, {pipeline_mode = #tpu.pipeline_mode<synchronous>, transform_indices = @transform_1, window_bounds = array<i64: 32, 128>}, {pipeline_mode = #tpu.pipeline_mode<synchronous>, transform_indices = @transform_2, window_bounds = array<i64: 1, 128>}, {pipeline_mode = #tpu.pipeline_mode<synchronous>, transform_indices = @transform_3, window_bounds = array<i64: 128, 64>}, {pipeline_mode = #tpu.pipeline_mode<synchronous>, transform_indices = @transform_4, window_bounds = array<i64: 1, 64>}, {transform_indices = @transform_5, window_bounds = array<i64: 2, 16, 32>}]} {
    %c0 = arith.constant 0 : index
    %c0_0 = arith.constant 0 : index
    %c0_1 = arith.constant 0 : index
    %0 = vector.load %arg1[%c0, %c0_0, %c0_1] : memref<2x32x16xf32, #tpu.memory_space<vmem>>, vector<1x32x16xf32>
    %1 = vector.shape_cast %0 : vector<1x32x16xf32> to vector<32x16xf32>
    %2 = tpu.transpose %1, [1, 0] : vector<32x16xf32> -> vector<16x32xf32>
    %cst = arith.constant dense<0.000000e+00> : vector<32xf32>
    %3 = vector.multi_reduction <add>, %2, %cst [0] : vector<16x32xf32> to vector<32xf32>
    %4 = vector.shape_cast %3 : vector<32xf32> to vector<1x32xf32>
    %cst_2 = arith.constant 1.600000e+01 : f32
    %5 = vector.broadcast %cst_2 : f32 to vector<1x32xf32>
    %6 = arith.divf %4, %5 : vector<1x32xf32>
    %c1 = arith.constant 1 : index
    %c0_3 = arith.constant 0 : index
    %c0_4 = arith.constant 0 : index
    %7 = vector.load %arg1[%c1, %c0_3, %c0_4] : memref<2x32x16xf32, #tpu.memory_space<vmem>>, vector<1x32x16xf32>
    %8 = vector.shape_cast %7 : vector<1x32x16xf32> to vector<32x16xf32>
    %9 = tpu.transpose %8, [1, 0] : vector<32x16xf32> -> vector<16x32xf32>
    %cst_5 = arith.constant dense<0.000000e+00> : vector<32xf32>
    %10 = vector.multi_reduction <add>, %9, %cst_5 [0] : vector<16x32xf32> to vector<32xf32>
    %11 = vector.shape_cast %10 : vector<32xf32> to vector<1x32xf32>
    %cst_6 = arith.constant 1.600000e+01 : f32
    %12 = vector.broadcast %cst_6 : f32 to vector<1x32xf32>
    %13 = arith.divf %11, %12 : vector<1x32xf32>
    %14 = tpu.concatenate %2, %9, %6, %13 in 0 : vector<16x32xf32>, vector<16x32xf32>, vector<1x32xf32>, vector<1x32xf32> -> vector<34x32xf32>
    %c0_7 = arith.constant 0 : index
    %c0_8 = arith.constant 0 : index
    %15 = vector.load %arg2[%c0_7, %c0_8] : memref<32x128xf32, #tpu.memory_space<vmem>>, vector<32x128xf32>
    %cst_9 = arith.constant dense<0.000000e+00> : vector<34x128xf32>
    %16 = tpu.matmul %14, %15, %cst_9 {dimension_numbers = #tpu.dot_dimension_numbers<[1], [0], [0], [1], [0, 0, 1, 1], [], []>} : vector<34x32xf32>, vector<32x128xf32>, vector<34x128xf32> -> vector<34x128xf32>
    %c0_10 = arith.constant 0 : index
    %c0_11 = arith.constant 0 : index
    %17 = vector.load %arg3[%c0_10, %c0_11] : memref<1x128xf32, #tpu.memory_space<vmem>>, vector<1x128xf32>
    %18 = vector.broadcast %17 : vector<1x128xf32> to vector<34x128xf32>
    %19 = arith.addf %16, %18 : vector<34x128xf32>
    %cst_12 = arith.constant 0.000000e+00 : f32
    %20 = vector.broadcast %cst_12 : f32 to vector<34x128xf32>
    %21 = arith.maximumf %19, %20 : vector<34x128xf32>
    %c0_13 = arith.constant 0 : index
    %c0_14 = arith.constant 0 : index
    %22 = vector.load %arg4[%c0_13, %c0_14] : memref<128x64xf32, #tpu.memory_space<vmem>>, vector<128x64xf32>
    %cst_15 = arith.constant dense<0.000000e+00> : vector<34x64xf32>
    %23 = tpu.matmul %21, %22, %cst_15 {dimension_numbers = #tpu.dot_dimension_numbers<[1], [0], [0], [1], [0, 0, 1, 1], [], []>} : vector<34x128xf32>, vector<128x64xf32>, vector<34x64xf32> -> vector<34x64xf32>
    %c0_16 = arith.constant 0 : index
    %c0_17 = arith.constant 0 : index
    %24 = vector.load %arg5[%c0_16, %c0_17] : memref<1x64xf32, #tpu.memory_space<vmem>>, vector<1x64xf32>
    %25 = vector.broadcast %24 : vector<1x64xf32> to vector<34x64xf32>
    %26 = arith.addf %23, %25 : vector<34x64xf32>
    %27 = arith.negf %26 : vector<34x64xf32>
    %28 = math.exp %27 : vector<34x64xf32>
    %cst_18 = arith.constant 1.000000e+00 : f32
    %29 = vector.broadcast %cst_18 : f32 to vector<34x64xf32>
    %30 = arith.addf %29, %28 : vector<34x64xf32>
    %31 = arith.divf %29, %30 : vector<34x64xf32>
    %32 = vector.extract_strided_slice %31 {offsets = [0, 0], sizes = [32, 32], strides = [1, 1]} : vector<34x64xf32> to vector<32x32xf32>
    %33 = vector.shape_cast %32 : vector<32x32xf32> to vector<2x16x32xf32>
    %34 = vector.extract_strided_slice %31 {offsets = [32, 32], sizes = [2, 32], strides = [1, 1]} : vector<34x64xf32> to vector<2x32xf32>
    %35 = vector.shape_cast %34 : vector<2x32xf32> to vector<2x1x32xf32>
    %36 = vector.broadcast %35 : vector<2x1x32xf32> to vector<2x16x32xf32>
    %37 = arith.mulf %36, %33 : vector<2x16x32xf32>
    %c0_19 = arith.constant 0 : index
    %c0_20 = arith.constant 0 : index
    %c0_21 = arith.constant 0 : index
    %38 = vector.load %arg6[%c0_19, %c0_20, %c0_21] : memref<2x16x32xf32, #tpu.memory_space<vmem>>, vector<2x16x32xf32>
    tpu.vector_store %arg6[%c0_19, %c0_20, %c0_21], %37 {strides = array<i32>} : memref<2x16x32xf32, #tpu.memory_space<vmem>>, vector<2x16x32xf32>,
    return
  }
  func.func @transform_0(%arg0: i32) -> (i32, i32, i32) {
    %c0_i32 = arith.constant 0 : i32
    %c0_i32_0 = arith.constant 0 : i32
    %c0_i32_1 = arith.constant 0 : i32
    return %arg0, %c0_i32, %c0_i32_0 : i32, i32, i32
  }
  func.func @transform_1(%arg0: i32) -> (i32, i32) {
    %c0_i32 = arith.constant 0 : i32
    %c0_i32_0 = arith.constant 0 : i32
    %c0_i32_1 = arith.constant 0 : i32
    return %c0_i32, %c0_i32_0 : i32, i32
  }
  func.func @transform_2(%arg0: i32) -> (i32, i32) {
    %c0_i32 = arith.constant 0 : i32
    %c0_i32_0 = arith.constant 0 : i32
    %c0_i32_1 = arith.constant 0 : i32
    return %c0_i32, %c0_i32_0 : i32, i32
  }
  func.func @transform_3(%arg0: i32) -> (i32, i32) {
    %c0_i32 = arith.constant 0 : i32
    %c0_i32_0 = arith.constant 0 : i32
    %c0_i32_1 = arith.constant 0 : i32
    return %c0_i32, %c0_i32_0 : i32, i32
  }
  func.func @transform_4(%arg0: i32) -> (i32, i32) {
    %c0_i32 = arith.constant 0 : i32
    %c0_i32_0 = arith.constant 0 : i32
    %c0_i32_1 = arith.constant 0 : i32
    return %c0_i32, %c0_i32_0 : i32, i32
  }
  func.func @transform_5(%arg0: i32) -> (i32, i32, i32) {
    %c0_i32 = arith.constant 0 : i32
    %c0_i32_0 = arith.constant 0 : i32
    %c0_i32_1 = arith.constant 0 : i32
    return %arg0, %c0_i32, %c0_i32_0 : i32, i32, i32
  }
}

</mosaic_0001>

<bundles_post_ra>
// kernel: channel_attention.1
= control target key start
LH: loop header
LB: loop body
LE: loop exit
PB: predicated region body
PF: predicated region fallthrough
CT: control target
= control target key end

     0   :  { %v669_v4 = vmov 0.0   ;;  %vm670_vm0 = vmmov 0   ;;  %s889_s0 = inlined_call_operand.vmem [shape: f32[2,32,16], index: 0, kind: input, shape index: {}]   ;;  %s890_s1 = inlined_call_operand.vmem [shape: f32[32,128], index: 1, kind: input, shape index: {}]   ;;  %s891_s2 = inlined_call_operand.vmem [shape: f32[1,128], index: 2, kind: input, shape index: {}]   ;;  %s892_s3 = inlined_call_operand.vmem [shape: f32[128,64], index: 3, kind: input, shape index: {}]   ;;  %s893_s4 = inlined_call_operand.vmem [shape: f32[1,64], index: 4, kind: input, shape index: {}]   ;;  %s894_s5 = inlined_call_operand.hbm [shape: f32[2,16,32], index: 5, kind: output, shape index: {}]  }
   0x1   :  { %v471_v0 = vld [vmem:[%s889_s0 + $0x20] sm:$0xff]  ;;  %v472_v2 = vld [vmem:[%s889_s0 + $0x28] sm:$0xff]  ;;  %517 = vmatprep.subr.mxu0 %v669_v4  ;;  %v121_v5 = vld [vmem:[%s890_s1 + $0x18] sm:$0xff]  ;;  %525 = vmatprep.mubr.msk.f32.mxu0 %vm670_vm0, %v669_v4 }
   0x2   :  { %v21_v1 = vld [vmem:[%s889_s0] sm:$0xff]  ;;  %74 = vxpose.xlu1.b32.start [1/4] (short) (narrow) %v471_v0, 16  ;;  %v22_v3 = vld [vmem:[%s889_s0 + $0x8] sm:$0xff]  ;;  %518 = vmatpush3.msra.mxu0 %v121_v5  ;;  %v120_v6 = vld [vmem:[%s890_s1 + $0x10] sm:$0xff] }
   0x3   :  { %25 = vxpose.xlu0.b32.start [1/4] (short) (narrow) %v21_v1, 16  ;;  %587 = vmatprep.subr.mxu1 %v669_v4 }
   0x4   :  { %519 = vmatprep.subr.mxu0 %v669_v4  ;;  %575 = vmatprep.mubr.msk.f32.mxu1 %vm670_vm0, %v669_v4 }
   0x5   :  { %10 = vsyncpa [#allocation3], 0  ;;  %v119_v7 = vld [vmem:[%s890_s1 + $0x8] sm:$0xff]  ;;  %v473_v8 = vld [vmem:[%s889_s0 + $0x30] sm:$0xff]  ;;  %520 = vmatpush3.msra.mxu0 %v120_v6  ;;  %vm57_vm1 = vcmask 261120   ;;  %vm116_vm2 = vcmask 1040384  }
   0x6   :  { %75 = vxpose.xlu1.b32.cont [2/4] (short) (narrow) %v472_v2, 16  ;;  %v23_v9 = vld [vmem:[%s889_s0 + $0x10] sm:$0xff]  ;;  %521 = vmatprep.subr.mxu0 %v669_v4  ;;  %v118_v10 = vld [vmem:[%s890_s1] sm:$0xff]  ;;  %v474_v11 = vld [vmem:[%s889_s0 + $0x38] sm:$0xff]  ;;  %s673_s22 = smov 96   ;;  %s674_s23 = smov [#allocation2]  }
   0x7   :  { %26 = vxpose.xlu0.b32.cont [2/4] (short) (narrow) %v22_v3, 16  ;;  %522 = vmatpush3.msra.mxu0 %v119_v7  ;;  %v24_v12 = vld [vmem:[%s889_s0 + $0x18] sm:$0xff]  ;;  %v253_v14 = vld [vmem:[%s892_s3 + $0x70] sm:$0xff]  ;;  %v252_v15 = vld [vmem:[%s892_s3 + $0x68] sm:$0xff]  ;;  %s460_s24 = sshll.u32 %s674_s23, 4  ;;  %s461_s24 = int_to_ptr.vmem [resolvable:$true] %s460_s24 }
   0x8   :  { %523 = vmatprep.subr.mxu0 %v669_v4  ;;  %v254_v13 = vld [vmem:[%s892_s3 + $0x78] sm:$0xff]  ;;  %v251_v16 = vld [vmem:[%s892_s3 + $0x60] sm:$0xff]  ;;  %v249_v18 = vld [vmem:[%s892_s3 + $0x50] sm:$0xff]  ;;  %s647_s25 = scalar_lea.vmem %s461_s24, 512  ;;  %p652_p1 = scmp.lt.s32.totalorder %s461_s24, %s461_s24 }
   0x9   :  { %524 = vmatpush3.msra.mxu0 %v118_v10  ;;  %603 = vmatpush3.msra.mxu1 %v254_v13  ;;  %v250_v17 = vld [vmem:[%s892_s3 + $0x58] sm:$0xff]  ;;  %v248_v19 = vld [vmem:[%s892_s3 + $0x48] sm:$0xff]  ;;  %v247_v20 = vld [vmem:[%s892_s3 + $0x40] sm:$0xff]  ;;  %p648_p0 = scmp.ne.s32.totalorder %s461_s24, %s647_s25  ;;  %p653_p2 = scmp.lt.s32.totalorder %s647_s25, %s647_s25 }
   0xa   :  { %76 = vxpose.xlu1.b32.cont [3/4] (short) (narrow) %v473_v8, 16  ;;  %540 = vmatprep.subr.mxu0 %v669_v4  ;;  %v787_v21 = vld [vmem:[%s892_s3 + $0x38] sm:$0xff]  ;;  %v794_v22 = vld [vmem:[%s892_s3 + $0x30] sm:$0xff]  ;;  %v801_v23 = vld [vmem:[%s892_s3 + $0x28] sm:$0xff] }
   0xb   :  { %27 = vxpose.xlu0.b32.cont [3/4] (short) (narrow) %v23_v9, 16  ;;  %588 = vmatprep.subr.mxu1 %v669_v4  ;;  %v808_v24 = vld [vmem:[%s892_s3 + $0x20] sm:$0xff]  ;;  %v815_v25 = vld [vmem:[%s892_s3 + $0x18] sm:$0xff]  ;;  %v241_v51 = vld [vmem:[%s892_s3 + $0x10] sm:$0xff]  ;;  %p654_p3 = por %p653_p2, %p652_p1 }
   0xc   :  { %604 = vmatpush3.msra.mxu1 %v253_v14  ;;  %v240_v52 = vld [vmem:[%s892_s3 + $0x8] sm:$0xff]  ;;  %v239_v53 = vld [vmem:[%s892_s3] sm:$0xff] }
   0xd   :  { %589 = vmatprep.subr.mxu1 %v669_v4  ;;  %v475_v54 = vld [vmem:[%s891_s2] ss:$0 sm:$0xff]  ;;  %p655_p4 = pnand %p654_p3, %p648_p0 }
   0xe   :  { %77 = vxpose.xlu1.b32.end [4/4] (short) (narrow) %v474_v11, 16  ;;  %605 = vmatpush3.msra.mxu1 %v252_v15 }
   0xf   :  { %28 = vxpose.xlu0.b32.end [4/4] (short) (narrow) %v24_v12, 16  ;;  %590 = vmatprep.subr.mxu1 %v669_v4  ;;  %v481_v12 = vld [vmem:[%s893_s4] ss:$0 sm:$0xff]  ;;  %s671_s4 = smov 32  }
  0x10   :  { %606 = vmatpush3.msra.mxu1 %v251_v16 }
  0x11   :  { %591 = vmatprep.subr.mxu1 %v669_v4 }
  0x12   :  { %607 = vmatpush3.msra.mxu1 %v250_v17 }
  0x13   :  { %592 = vmatprep.subr.mxu1 %v669_v4 }
  0x14   :  { %608 = vmatpush3.msra.mxu1 %v249_v18 }
  0x15   :  { %593 = vmatprep.subr.mxu1 %v669_v4 }
  0x16   :  { %609 = vmatpush3.msra.mxu1 %v248_v19 }
  0x17   :  { %594 = vmatprep.subr.mxu1 %v669_v4 }
  0x18   :  { %610 = vmatpush3.msra.mxu1 %v247_v20 }
  0x19   :  { %595 = vmatprep.subr.mxu1 %v669_v4 }
  0x1a   :  { %611 = vmatpush3.msra.mxu1 %v787_v21 }
  0x1b   :  { %596 = vmatprep.subr.mxu1 %v669_v4 }
  0x1c   :  { %612 = vmatpush3.msra.mxu1 %v794_v22 }
  0x1d   :  { %597 = vmatprep.subr.mxu1 %v669_v4 }
  0x1e   :  { %613 = vmatpush3.msra.mxu1 %v801_v23 }
  0x1f   :  { %598 = vmatprep.subr.mxu1 %v669_v4 }
  0x20   :  { %614 = vmatpush3.msra.mxu1 %v808_v24 }
  0x21   :  { %599 = vmatprep.subr.mxu1 %v669_v4 }
  0x22   :  { %615 = vmatpush3.msra.mxu1 %v815_v25 }
  0x23   :  { %600 = vmatprep.subr.mxu1 %v669_v4 }
  0x24   :  { %616 = vmatpush3.msra.mxu1 %v241_v51 }
  0x25   :  { %601 = vmatprep.subr.mxu1 %v669_v4 }
  0x26   :  { %617 = vmatpush3.msra.mxu1 %v240_v52 }
  0x27   :  { %602 = vmatprep.subr.mxu1 %v669_v4 }
  0x28   :  { %618 = vmatpush3.msra.mxu1 %v239_v53 }
  0x7e   :  { %v90_v26 = vpop.trf.xlu1 }
  0x7f   :  { %v41_v27 = vpop.trf.xlu0  ;;  %v106_v28 = vsel %vm57_vm1, %v90_v26, 0.0 }
  0x80   :  { %526 = vmatmul.mubr.msk.f32.vlgmr.msra.gmra.mxu0 %vm57_vm1, %v41_v27  ;;  %v58_v31 = vsel %vm57_vm1, %v41_v27, 0.0 }
  0x81   :  { %528 = vmatprep.mubr.msk.f32.mxu0 %vm670_vm0, %v669_v4  ;;  %541 = vmatpush3.msra.mxu0 %v254_v13 }
  0x82   :  { %542 = vmatprep.subr.mxu0 %v669_v4  ;;  %v91_v29 = vpop.trf.xlu1 }
  0x83   :  { %v42_v30 = vpop.trf.xlu0  ;;  %543 = vmatpush3.msra.mxu0 %v253_v14  ;;  %v107_v32 = vsel %vm57_vm1, %v91_v29, 0.0 }
  0x84   :  { %v59_v33 = vsel %vm57_vm1, %v42_v30, 0.0  ;;  %529 = vmatmul.mubr.msk.f32.gmra.mxu0 %vm57_vm1, %v42_v30  ;;  %544 = vmatprep.subr.mxu0 %v669_v4  ;;  %v108_v34 = vadd.f32 %v107_v32, %v106_v28 }
  0x85   :  { %v60_v35 = vadd.f32 %v59_v33, %v58_v31  ;;  %531 = vmatprep.mubr.msk.f32.mxu0 %vm670_vm0, %v669_v4  ;;  %545 = vmatpush3.msra.mxu0 %v252_v15 }
  0x86   :  { %546 = vmatprep.subr.mxu0 %v669_v4  ;;  %v109_v36 = vrot.slane %v108_v34, 4 }
  0x87   :  { %v61_v37 = vrot.slane %v60_v35, 4  ;;  %547 = vmatpush3.msra.mxu0 %v251_v16 }
  0x88   :  { %532 = vmatmul.mubr.msk.f32.gmra.mxu0 %vm57_vm1, %v90_v26  ;;  %548 = vmatprep.subr.mxu0 %v669_v4  ;;  %v110_v38 = vadd.f32 %v109_v36, %v108_v34 }
  0x89   :  { %v62_v39 = vadd.f32 %v61_v37, %v60_v35  ;;  %534 = vmatprep.mubr.msk.f32.mxu0 %vm670_vm0, %v669_v4  ;;  %549 = vmatpush3.msra.mxu0 %v250_v17 }
  0x8a   :  { %550 = vmatprep.subr.mxu0 %v669_v4  ;;  %v111_v40 = vrot.slane %v110_v38, 2 }
  0x8b   :  { %v63_v41 = vrot.slane %v62_v39, 2  ;;  %551 = vmatpush3.msra.mxu0 %v249_v18 }
  0x8c   :  { %535 = vmatmul.mubr.msk.f32.gmra.mxu0 %vm57_vm1, %v91_v29  ;;  %552 = vmatprep.subr.mxu0 %v669_v4  ;;  %v112_v42 = vadd.f32 %v111_v40, %v110_v38 }
  0x8d   :  { %v64_v43 = vadd.f32 %v63_v41, %v62_v39  ;;  %537 = vmatprep.mubr.msk.f32.mxu0 %vm670_vm0, %v669_v4  ;;  %553 = vmatpush3.msra.mxu0 %v248_v19 }
  0x8e   :  { %554 = vmatprep.subr.mxu0 %v669_v4  ;;  %v113_v44 = vrot.slane %v112_v42, 1 }
  0x8f   :  { %v65_v45 = vrot.slane %v64_v43, 1  ;;  %555 = vmatpush3.msra.mxu0 %v247_v20 }
  0x90   :  { %556 = vmatprep.subr.mxu0 %v669_v4  ;;  %v114_v47 = vadd.f32 %v113_v44, %v112_v42 }
  0x91   :  { %v66_v46 = vadd.f32 %v65_v45, %v64_v43  ;;  %557 = vmatpush3.msra.mxu0 %v787_v21 }
  0x92   :  { %558 = vmatprep.subr.mxu0 %v669_v4  ;;  %v115_v49 = vmul.f32 0.0625, %v114_v47 }
  0x93   :  { %v68_v48 = vmul.f32 0.0625, %v66_v46  ;;  %559 = vmatpush3.msra.mxu0 %v794_v22  ;;  %v672_v46 = vmov 1966171168  }
  0x94   :  { %560 = vmatprep.subr.mxu0 %v669_v4  ;;  %v384_v47 = vunpack.c.l.s4 %v672_v46 }
  0x95   :  { %v117_v50 = vsel %vm116_vm2, %v68_v48, %v115_v49  ;;  %561 = vmatpush3.msra.mxu0 %v801_v23  ;;  %v386_v48 = vlaneseq }
  0x96   :  { %538 = vmatmul.mubr.msk.f32.gmra.mxu0 %vm57_vm1, %v117_v50  ;;  %562 = vmatprep.subr.mxu0 %v669_v4  ;;  %v385_v49 = vunpack.c.0.s8 %v384_v47 }
  0x97   :  { %563 = vmatpush3.msra.mxu0 %v808_v24  ;;  %572 = vmatprep.mubr.msk.f32.mxu0 %vm670_vm0, %v669_v4  ;;  %v387_v50 = vshrl.u32 %v386_v48, 7 }
  0x98   :  { %564 = vmatprep.subr.mxu0 %v669_v4 }
  0x99   :  { %565 = vmatpush3.msra.mxu0 %v815_v25 }
  0x9a   :  { %566 = vmatprep.subr.mxu0 %v669_v4 }
  0x9b   :  { %567 = vmatpush3.msra.mxu0 %v241_v51  ;;  %v388_v51 = vsub.s32 %v385_v49, %v387_v50 }
  0x9c   :  { %568 = vmatprep.subr.mxu0 %v669_v4 }
  0x9d   :  { %569 = vmatpush3.msra.mxu0 %v240_v52 }
  0x9e   :  { %570 = vmatprep.subr.mxu0 %v669_v4 }
  0x9f   :  { %571 = vmatpush3.msra.mxu0 %v239_v53 }
 0x140   :  { %v210_v55 = vpop.f32.mrf.mxu0 }
 0x141   :  { %v211_v56 = vadd.f32 %v475_v54, %v210_v55  ;;  %v407_v55 = vsub.s32 0, %v387_v50 }
 0x142   :  { %v527_v57 = vpop.f32.mrf.mxu0 }
 0x143   :  { %v234_v58 = vmax.f32 %v211_v56, 0.0 }
 0x144   :  { %v215_v59 = vpop.f32.mrf.mxu0 }
 0x145   :  { %v216_v60 = vadd.f32 %v475_v54, %v215_v59  ;;  %573 = vmatmul.mubr.f32.vlgmr.msra.gmra.mxu0 %v234_v58 }
 0x146   :  { %v530_v61 = vpop.f32.mrf.mxu0 }
 0x147   :  { %v235_v62 = vmax.f32 %v216_v60, 0.0 }
 0x148   :  { %v220_v63 = vpop.f32.mrf.mxu0 }
 0x149   :  { %v221_v0 = vadd.f32 %v475_v54, %v220_v63  ;;  %576 = vmatmul.mubr.f32.vlgmr.msra.gmra.mxu1 %v235_v62 }
 0x14a   :  { %v533_v1 = vpop.f32.mrf.mxu0  ;;  %578 = vmatprep.mubr.msk.f32.mxu1 %vm670_vm0, %v669_v4 }
 0x14b   :  { %v236_v2 = vmax.f32 %v221_v0, 0.0 }
 0x14c   :  { %v225_v3 = vpop.f32.mrf.mxu0 }
 0x14d   :  { %v226_v5 = vadd.f32 %v475_v54, %v225_v3  ;;  %579 = vmatmul.mubr.f32.gmra.mxu1 %v236_v2 }
 0x14e   :  { %v536_v6 = vpop.f32.mrf.mxu0  ;;  %581 = vmatprep.mubr.msk.f32.mxu1 %vm670_vm0, %v669_v4 }
 0x14f   :  { %v237_v7 = vmax.f32 %v226_v5, 0.0 }
 0x151   :  { %582 = vmatmul.mubr.f32.gmra.mxu1 %v237_v7 }
 0x152   :  { %584 = vmatprep.mubr.msk.f32.mxu1 %vm670_vm0, %v669_v4 }
 0x156   :  { %v230_v8 = vpop.f32.mrf.mxu0 }
 0x157   :  { %v231_v9 = vadd.f32 %v475_v54, %v230_v8 }
 0x158   :  { %v539_v10 = vpop.f32.mrf.mxu0 }
 0x159   :  { %v238_v11 = vmax.f32 %v231_v9, 0.0 }
 0x15b   :  { %585 = vmatmul.mubr.f32.gmra.mxu1 %v238_v11 }
 0x205   :  { %v328_v13 = vpop.f32.mrf.mxu0 }
 0x206   :  { %v329_v14 = vadd.f32 %v481_v12, %v328_v13 }
 0x207   :  { %v574_v15 = vpop.f32.mrf.mxu0 }
 0x208   :  { %v482_v16 = vmul.f32 -1.442695, %v329_v14 }
 0x209   :  { %v333_v17 = vpop.f32.mrf.mxu1 }
 0x20a   :  { %627 = vpow2.f32 %v482_v16  ;;  %v334_v18 = vadd.f32 %v481_v12, %v333_v17 }
 0x20b   :  { %v577_v19 = vpop.f32.mrf.mxu1 }
 0x20c   :  { %v483_v20 = vmul.f32 -1.442695, %v334_v18 }
 0x20d   :  { %v338_v21 = vpop.f32.mrf.mxu1 }
 0x20e   :  { %629 = vpow2.f32 %v483_v20  ;;  %v339_v4 = vadd.f32 %v481_v12, %v338_v21 }
 0x20f   :  { %v580_v22 = vpop.f32.mrf.mxu1 }
 0x210   :  { %v484_v23 = vmul.f32 -1.442695, %v339_v4 }
 0x211   :  { %v343_v24 = vpop.f32.mrf.mxu1 }
 0x212   :  { %631 = vpow2.f32 %v484_v23  ;;  %v344_v25 = vadd.f32 %v481_v12, %v343_v24 }
 0x213   :  { %v583_v26 = vpop.f32.mrf.mxu1 }
 0x214   :  { %v485_v27 = vmul.f32 -1.442695, %v344_v25 }
 0x216   :  { %633 = vpow2.f32 %v485_v27 }
 0x217   :  { %v628_v28 = vpop.eup %627 }
 0x218   :  { %v367_v29 = vadd.f32 1.0, %v628_v28 }
 0x21a   :  { %635 = vrcp.f32 %v367_v29 }
 0x21b   :  { %v630_v30 = vpop.eup %629  ;;  %v348_v31 = vpop.f32.mrf.mxu1 }
 0x21c   :  { %v368_v32 = vadd.f32 1.0, %v630_v30  ;;  %v349_v33 = vadd.f32 %v481_v12, %v348_v31 }
 0x21d   :  { %v586_v34 = vpop.f32.mrf.mxu1 }
 0x21e   :  { %637 = vrcp.f32 %v368_v32  ;;  %v486_v43 = vmul.f32 -1.442695, %v349_v33 }
 0x21f   :  { %v632_v35 = vpop.eup %631 }
 0x220   :  { %v369_v36 = vadd.f32 1.0, %v632_v35 }
 0x222   :  { %639 = vrcp.f32 %v369_v36 }
 0x223   :  { %v634_v37 = vpop.eup %633 }
 0x224   :  { %v370_v38 = vadd.f32 1.0, %v634_v37 }
 0x226   :  { %641 = vrcp.f32 %v370_v38 }
 0x227   :  { %v636_v39 = vpop.eup %635  ;;  %643 = vpow2.f32 %v486_v43 }
 0x228   :  { %419 = vrot.lane.b32.xlu0 %v636_v39, %s671_s4 }
 0x22b   :  { %v638_v40 = vpop.eup %637 }
 0x22c   :  { %421 = vrot.lane.b32.xlu1 %v638_v40, %s671_s4 }
 0x22f   :  { %v640_v41 = vpop.eup %639 }
 0x230   :  { %423 = vrot.lane.b32.xlu1 %v640_v41, %s671_s4 }
 0x233   :  { %v642_v42 = vpop.eup %641 }
 0x234   :  { %425 = vrot.lane.b32.xlu1 %v642_v42, %s671_s4  ;;  %v644_v44 = vpop.eup %643 }
 0x235   :  { %v371_v45 = vadd.f32 1.0, %v644_v44 }
 0x237   :  { %645 = vrcp.f32 %v371_v45 }
 0x244   :  { %v646_v52 = vpop.eup %645 }
 0x245   :  { %v389_v53 = vrot.slane %v646_v52, %v388_v51 }
 0x247   :  { %v397_v54 = vrot.slane %v389_v53, %v388_v51  ;;  %v390_v57 = vcombine.high %v389_v53, %v389_v53 }
 0x249   :  { %v408_v56 = vrot.slane %v397_v54, %v407_v55  ;;  %v404_v60 = vrot.slane %v390_v57, %v388_v51 }
 0x24b   :  { %v412_v63 = vrot.slane %v404_v60, %v407_v55 }
 0x29a   :  { %v420_v58 = vpop.permute.xlu0 %419 }
 0x29b   :  { %v431_v59 = vmul.f32 %v420_v58, %v408_v56 }
 0x29d   :  { %439 = vrot.lane.b32.xlu1 %v431_v59, %s673_s22 }
 0x29e   :  { %v422_v61 = vpop.permute.xlu1 %421 }
 0x29f   :  { %v432_v62 = vmul.f32 %v422_v61, %v408_v56 }
 0x2a1   :  { %441 = vrot.lane.b32.xlu0 %v432_v62, %s673_s22 }
 0x2a2   :  { %v424_v0 = vpop.permute.xlu1 %423 }
 0x2a3   :  { %v433_v1 = vmul.f32 %v424_v0, %v412_v63 }
 0x2a5   :  { %443 = vrot.lane.b32.xlu1 %v433_v1, %s673_s22 }
 0x2a6   :  { %v426_v2 = vpop.permute.xlu1 %425 }
 0x2a7   :  { %v434_v3 = vmul.f32 %v426_v2, %v412_v63 }
 0x2a9   :  { %445 = vrot.lane.b32.xlu0 %v434_v3, %s673_s22 }
 0x30f   :  { %v440_v5 = vpop.permute.xlu1 %439 }
 0x310   :  { %451 = vst.msk [vmem:[#allocation2] sm:$0xff] %vm57_vm1, %v440_v5 }
 0x313   :  { %v442_v6 = vpop.permute.xlu0 %441 }
 0x314   :  { %452 = vst.msk [vmem:[#allocation2 + $0x8] sm:$0xff] %vm57_vm1, %v442_v6 }
 0x317   :  { %v444_v7 = vpop.permute.xlu1 %443 }
 0x318   :  { %453 = vst.msk [vmem:[#allocation2 + $0x10] sm:$0xff] %vm57_vm1, %v444_v7 }
 0x31b   :  { %v446_v8 = vpop.permute.xlu0 %445 }
 0x31c   :  { %454 = vst.msk [vmem:[#allocation2 + $0x18] sm:$0xff] %vm57_vm1, %v446_v8 }
 0x31d   :  { %658 = shalt.err (!%p655_p4)
}
 0x31e   :  { %s675_s26 = smov 128   ;;  %s676_s27 = smov 8  }
 0x31f   :  { %466 = dma.vmem_to_hbm [thread:$0]  %s461_s24, 512, %s894_s5, [#allocation3], %s675_s26, %s675_s26, %s676_s27  }
 0x320   :  { %667 = dma.done.wait [#allocation3], 512  }
 0x321   :  { %668 = vsyncadd [#allocation3], 4294966784 }
 0x322   :  { %470 = vsyncpa [#allocation3], 1 }

</bundles_post_ra>
